<compile_context>
chip_gen: v7x
topology: tpu7x:2x2x1
jax: 0.10.0
libtpu: 0.0.40
codegen_flags: <defaults>
</compile_context>

<pallas_src>
import functools

import jax
import jax.numpy as jnp
from jax import lax
from jax.experimental import pallas as pl
from jax.experimental.pallas import tpu as pltpu


def angleproto_kernel(w_ref, b_ref, x_ref, loss_ref, *, n_valid, m_utts, d_pad):
    """Mean-anchor, cosine matrix and softmax cross-entropy in one invocation.

    w_ref, b_ref : SMEM (1,) f32 scalars
    x_ref        : VMEM [Np, M*Dp] (source dtype, zero-padded N/D in wrapper)
    loss_ref     : VMEM (1, 1) f32 scalar loss
    """
    n_pad = x_ref.shape[0]

    # Per-utterance slabs live at static, 128-aligned lane offsets; read them
    # lazily (no single huge materialized block) and accumulate on the VPU.
    positive = x_ref[:, 0:d_pad].astype(jnp.float32)                  # [Np, Dp]

    anchor = x_ref[:, d_pad:2 * d_pad].astype(jnp.float32)            # [Np, Dp]
    for j in range(2, m_utts):                                        # static loop
        anchor = anchor + x_ref[:, j * d_pad:(j + 1) * d_pad].astype(jnp.float32)
    anchor = anchor * (1.0 / (m_utts - 1))

    w = w_ref[0]
    b = b_ref[0]

    # Pre-normalize rows (EUP rsqrt + O(N*D) VPU mults) so the matmul output is
    # already the cosine matrix; fold w into the positive side so it is also
    # pre-scaled. eps matches F.cosine_similarity's 1e-8 norm clamp (applied to
    # norm^2 here; negligible difference for near-zero embeddings).
    pos_sq = jnp.sum(positive * positive, axis=-1, keepdims=True)     # [Np, 1]
    anc_sq = jnp.sum(anchor * anchor, axis=-1, keepdims=True)         # [Np, 1]
    pos_n = positive * (w * lax.rsqrt(jnp.maximum(pos_sq, 1e-16)))
    anc_n = anchor * lax.rsqrt(jnp.maximum(anc_sq, 1e-16))

    # Contract dim 1 of both operands (pos_n @ anc_n.T); result is already
    # w-scaled, only the +b add remains. (At small N*D any transpose the MXU
    # needs for the ((1,),(1,)) contraction is negligible.)
    logits = lax.dot_general(pos_n, anc_n, (((1,), (1,)), ((), ())),
                             preferred_element_type=jnp.float32) + b  # [Np, Np]

    if n_valid != n_pad:   # static: only emitted when N was actually padded
        col = lax.broadcasted_iota(jnp.int32, logits.shape, 1)
        logits = jnp.where(col < n_valid, logits, -1e30)

    # Row-wise logsumexp (numerically stable).
    row_max = jnp.max(logits, axis=-1, keepdims=True)                 # [Np, 1]
    lse = jnp.log(jnp.sum(jnp.exp(logits - row_max), axis=-1, keepdims=True)) + row_max

    # Diagonal logits computed elementwise from the (already w-scaled) rows.
    diag = jnp.sum(pos_n * anc_n, axis=-1, keepdims=True) + b         # [Np, 1]

    per_row = lse - diag                                              # [Np, 1]
    if n_valid != n_pad:
        row = lax.broadcasted_iota(jnp.int32, per_row.shape, 0)
        per_row = jnp.where(row < n_valid, per_row, 0.0)

    # Keep the final reduction on the vector side; (1,1) VMEM scalar output.
    loss_ref[...] = jnp.sum(per_row, axis=0, keepdims=True) * (1.0 / n_valid)


def angleproto_loss(x, w, b):
    """x: [N, M, D] embeddings, w/b: scalar params. Returns (loss, labels)."""
    n, m, d = x.shape
    assert m >= 2

    # Keep bf16 on the wire (memory-bound transfer); anything else goes to f32.
    if x.dtype not in (jnp.bfloat16, jnp.float32):
        x = x.astype(jnp.float32)
    itemsize = jnp.dtype(x.dtype).itemsize

    # Lane/sublane-dense padding: D -> multiple of 128 (lanes), N -> multiple of
    # the sublane pack (8 for f32, 16 for bf16). Zero-padding D is exact; padded
    # N rows/cols are masked in the kernel (static no-op when N is aligned).
    d_pad = max(128, ((d + 127) // 128) * 128)
    sub = 16 if x.dtype == jnp.bfloat16 else 8
    n_pad = max(sub, ((n + sub - 1) // sub) * sub)

    if (d_pad != d) or (n_pad != n):
        x = jnp.pad(x, ((0, n_pad - n), (0, 0), (0, d_pad - d)))
    # Free row-major reshape after D padding: lane width = M*Dp (multiple of
    # 128), so the M axis never lands on (and pads) sublanes.
    x2d = x.reshape(n_pad, m * d_pad)

    w_arr = jnp.asarray(w, dtype=jnp.float32).reshape((1,))
    b_arr = jnp.asarray(b, dtype=jnp.float32).reshape((1,))

    # VMEM budget: gridless single-shot -> x once (no double buffering) + f32
    # working set (pos/anc rows, logits + softmax temporaries) + Mosaic slack.
    x_bytes = n_pad * m * d_pad * itemsize
    needed = x_bytes + 4 * n_pad * d_pad * 4 + 6 * n_pad * n_pad * 4 + (2 << 20)
    try:
        vmem_cap = int(pltpu.get_tpu_info().vmem_capacity_bytes)
    except Exception:
        vmem_cap = 64 << 20   # conservative (v7x physical VMEM)
    vmem_limit = int(min(max(needed, 4 << 20), int(vmem_cap * 0.85)))

    cost = pl.CostEstimate(
        flops=2 * n_pad * n_pad * d_pad + (m + 6) * n_pad * d_pad,
        transcendentals=n_pad * n_pad + 3 * n_pad,
        bytes_accessed=x_bytes + 2 * 4 + 4,
    )

    kernel = functools.partial(angleproto_kernel, n_valid=n, m_utts=m, d_pad=d_pad)

    # TODO(synk): add a streamed/gridded path (row-tiled pos/anc normalization
    # with double-buffered BlockSpecs + a logits/LSE phase over resident anc_n,
    # 'parallel' N axis for v7x's two TensorCores) once N*M*D approaches the
    # VMEM budget; small batches stay on this single-shot path.
    loss = pl.pallas_call(
        kernel,
        out_shape=jax.ShapeDtypeStruct((1, 1), jnp.float32),
        in_specs=[
            pl.BlockSpec(memory_space=pltpu.MemorySpace.SMEM),   # w
            pl.BlockSpec(memory_space=pltpu.MemorySpace.SMEM),   # b
            pl.BlockSpec(memory_space=pltpu.MemorySpace.VMEM),   # x (untiled 2-D)
        ],
        out_specs=pl.BlockSpec(memory_space=pltpu.MemorySpace.VMEM),
        compiler_params=pltpu.CompilerParams(vmem_limit_bytes=vmem_limit),
        cost_estimate=cost,
    )(w_arr, b_arr, x2d)

    labels = jnp.arange(n, dtype=jnp.int32)
    return loss[0, 0], labels


def _reference_loss(x, w, b):
    """Pure-JAX reference for sanity checking (mirrors the PyTorch forward)."""
    x = x.astype(jnp.float32)
    anchor = jnp.mean(x[:, 1:, :], axis=1)
    positive = x[:, 0, :]
    dots = positive @ anchor.T
    denom = (jnp.maximum(jnp.linalg.norm(positive, axis=-1, keepdims=True), 1e-8)
             * jnp.maximum(jnp.linalg.norm(anchor, axis=-1, keepdims=True), 1e-8).T)
    logits = dots / denom * w + b
    lse = jax.nn.logsumexp(logits, axis=-1)
    diag = jnp.diagonal(logits)
    return jnp.mean(lse - diag)


if __name__ == "__main__":
    # Module __init__ defaults and small deterministic inputs.
    init_w = jnp.float32(10.0)
    init_b = jnp.float32(-5.0)

    N, M, D = 8, 3, 32   # speakers, utterances per speaker, embedding dim
    key = jax.random.PRNGKey(0)
    x = jax.random.normal(key, (N, M, D), dtype=jnp.float32)

    loss, label = angleproto_loss(x, init_w, init_b)
    loss = jax.block_until_ready(loss)
    label = jax.block_until_ready(label)

    ref = _reference_loss(x, init_w, init_b)
    assert jnp.allclose(loss, ref, rtol=1e-4, atol=1e-4), (loss, ref)
    assert label.shape == (N,) and int(label[0]) == 0 and int(label[-1]) == N - 1

    print("KERNEL_OK")
</pallas_src>

<mosaic_0001>
module attributes {stable_mosaic.version = 11 : i64} {
  func.func @angleproto_kernel(%arg0: memref<1xf32, #tpu.memory_space<smem>>, %arg1: memref<1xf32, #tpu.memory_space<smem>>, %arg2: memref<8x384xf32, #tpu.memory_space<vmem>>, %arg3: memref<1x1xf32, #tpu.memory_space<vmem>>) attributes {dimension_semantics = [], scalar_prefetch = 0 : i64, scratch_operands = 0 : i64, tpu.core_type = #tpu.core_type<tc>} {
    %c0 = arith.constant 0 : index
    %c0_0 = arith.constant 0 : index
    %0 = vector.load %arg2[%c0, %c0_0] : memref<8x384xf32, #tpu.memory_space<vmem>>, vector<8x128xf32>
    %c0_1 = arith.constant 0 : index
    %c128 = arith.constant 128 : index
    %1 = vector.load %arg2[%c0_1, %c128] : memref<8x384xf32, #tpu.memory_space<vmem>>, vector<8x128xf32>
    %c0_2 = arith.constant 0 : index
    %c256 = arith.constant 256 : index
    %2 = vector.load %arg2[%c0_2, %c256] : memref<8x384xf32, #tpu.memory_space<vmem>>, vector<8x128xf32>
    %3 = arith.addf %1, %2 : vector<8x128xf32>
    %cst = arith.constant 5.000000e-01 : f32
    %4 = vector.broadcast %cst : f32 to vector<8x128xf32>
    %5 = arith.mulf %3, %4 : vector<8x128xf32>
    %c0_3 = arith.constant 0 : index
    %6 = memref.load %arg0[%c0_3] : memref<1xf32, #tpu.memory_space<smem>>
    %c0_4 = arith.constant 0 : index
    %7 = memref.load %arg1[%c0_4] : memref<1xf32, #tpu.memory_space<smem>>
    %8 = arith.mulf %0, %0 : vector<8x128xf32>
    %cst_5 = arith.constant dense<0.000000e+00> : vector<8xf32>
    %9 = vector.multi_reduction <add>, %8, %cst_5 [1] : vector<8x128xf32> to vector<8xf32>
    %10 = vector.shape_cast %9 : vector<8xf32> to vector<8x1xf32>
    %11 = arith.mulf %5, %5 : vector<8x128xf32>
    %cst_6 = arith.constant dense<0.000000e+00> : vector<8xf32>
    %12 = vector.multi_reduction <add>, %11, %cst_6 [1] : vector<8x128xf32> to vector<8xf32>
    %13 = vector.shape_cast %12 : vector<8xf32> to vector<8x1xf32>
    %cst_7 = arith.constant 1.000000e-16 : f32
    %14 = vector.broadcast %cst_7 : f32 to vector<8x1xf32>
    %15 = arith.maximumf %10, %14 : vector<8x1xf32>
    %16 = math.rsqrt %15 : vector<8x1xf32>
    %17 = vector.broadcast %6 : f32 to vector<8x1xf32>
    %18 = arith.mulf %17, %16 : vector<8x1xf32>
    %19 = vector.broadcast %18 : vector<8x1xf32> to vector<8x128xf32>
    %20 = arith.mulf %0, %19 : vector<8x128xf32>
    %cst_8 = arith.constant 1.000000e-16 : f32
    %21 = vector.broadcast %cst_8 : f32 to vector<8x1xf32>
    %22 = arith.maximumf %13, %21 : vector<8x1xf32>
    %23 = math.rsqrt %22 : vector<8x1xf32>
    %24 = vector.broadcast %23 : vector<8x1xf32> to vector<8x128xf32>
    %25 = arith.mulf %5, %24 : vector<8x128xf32>
    %cst_9 = arith.constant dense<0.000000e+00> : vector<8x8xf32>
    %26 = tpu.matmul %20, %25, %cst_9 {dimension_numbers = #tpu.dot_dimension_numbers<[1], [1], [0], [0], [0, 0, 1, 0], [], []>} : vector<8x128xf32>, vector<8x128xf32>, vector<8x8xf32> -> vector<8x8xf32>
    %27 = vector.broadcast %7 : f32 to vector<8x8xf32>
    %28 = arith.addf %26, %27 : vector<8x8xf32>
    %cst_10 = arith.constant dense<0xFF800000> : vector<8xf32>
    %29 = vector.multi_reduction <maximumf>, %28, %cst_10 [1] : vector<8x8xf32> to vector<8xf32>
    %30 = vector.shape_cast %29 : vector<8xf32> to vector<8x1xf32>
    %31 = vector.broadcast %30 : vector<8x1xf32> to vector<8x8xf32>
    %32 = arith.subf %28, %31 : vector<8x8xf32>
    %33 = math.exp %32 : vector<8x8xf32>
    %cst_11 = arith.constant dense<0.000000e+00> : vector<8xf32>
    %34 = vector.multi_reduction <add>, %33, %cst_11 [1] : vector<8x8xf32> to vector<8xf32>
    %35 = vector.shape_cast %34 : vector<8xf32> to vector<8x1xf32>
    %36 = math.log %35 : vector<8x1xf32>
    %37 = arith.addf %36, %30 : vector<8x1xf32>
    %38 = arith.mulf %20, %25 : vector<8x128xf32>
    %cst_12 = arith.constant dense<0.000000e+00> : vector<8xf32>
    %39 = vector.multi_reduction <add>, %38, %cst_12 [1] : vector<8x128xf32> to vector<8xf32>
    %40 = vector.shape_cast %39 : vector<8xf32> to vector<8x1xf32>
    %41 = vector.broadcast %7 : f32 to vector<8x1xf32>
    %42 = arith.addf %40, %41 : vector<8x1xf32>
    %43 = arith.subf %37, %42 : vector<8x1xf32>
    %cst_13 = arith.constant dense<0.000000e+00> : vector<1xf32>
    %44 = vector.multi_reduction <add>, %43, %cst_13 [0] : vector<8x1xf32> to vector<1xf32>
    %45 = vector.shape_cast %44 : vector<1xf32> to vector<1x1xf32>
    %cst_14 = arith.constant 1.250000e-01 : f32
    %46 = vector.broadcast %cst_14 : f32 to vector<1x1xf32>
    %47 = arith.mulf %45, %46 : vector<1x1xf32>
    %c0_15 = arith.constant 0 : index
    %c0_16 = arith.constant 0 : index
    %48 = vector.load %arg3[%c0_15, %c0_16] : memref<1x1xf32, #tpu.memory_space<vmem>>, vector<1x1xf32>
    tpu.vector_store %arg3[%c0_15, %c0_16], %47 {strides = array<i32>} : memref<1x1xf32, #tpu.memory_space<vmem>>, vector<1x1xf32>,
    return
  }
}

</mosaic_0001>

<bundles_post_ra>
// kernel: tpu_custom_call.1
= control target key start
LH: loop header
LB: loop body
LE: loop exit
PB: predicated region body
PF: predicated region fallthrough
CT: control target
= control target key end

     0   :  { %10 = vsyncpa [#allocation5], 0  ;;  %s284_s0 = inlined_call_operand.<no memory space> [shape: f32[1], index: 0, kind: input, shape index: {}]   ;;  %s285_s1 = inlined_call_operand.<no memory space> [shape: f32[1], index: 1, kind: input, shape index: {}]   ;;  %s286_s2 = inlined_call_operand.hbm [shape: f32[8,384], index: 2, kind: input, shape index: {}]   ;;  %s287_s3 = inlined_call_operand.hbm [shape: f32[1,1], index: 3, kind: output, shape index: {}]  }
   0x1   :  { %11 = vsyncpa [#allocation6], 0  ;;  %s230_s12 = smov [#allocation4]   ;;  %s182_s16 = scalar_lea.hbm %s286_s2, 384 }
   0x2   :  { %s22_s13 = sshll.u32 %s230_s12, 4  ;;  %p183_p0 = scmp.ne.s32.totalorder %s286_s2, %s182_s16  ;;  %s23_s13 = int_to_ptr.vmem [resolvable:$true] %s22_s13 }
   0x3   :  { %p186_p1 = scmp.lt.u32.totalorder %s182_s16, %s286_s2 }
   0x5   :  { %p188_p2 = pnand %p186_p1, %p183_p0 }
   0x7   :  { %191 = shalt.err (!%p188_p2)
}
   0x8   :  { %s192_s21 = scalar_lea.vmem %s23_s13, 384  ;;  %p197_p4 = scmp.lt.s32.totalorder %s23_s13, %s23_s13 }
   0x9   :  { %p193_p3 = scmp.ne.s32.totalorder %s23_s13, %s192_s21  ;;  %p198_p5 = scmp.lt.s32.totalorder %s192_s21, %s192_s21 }
   0xb   :  { %p199_p6 = por %p198_p5, %p197_p4 }
   0xd   :  { %p200_p7 = pnand %p199_p6, %p193_p3 }
   0xf   :  { %203 = shalt.err (!%p200_p7)
}
  0x10   :  { %25 = dma.hbm_to_vmem [thread:$0]  %s286_s2, 384, %s23_s13, [#allocation5]  }
  0x11   :  { %226 = dma.done.wait [#allocation5], 384  }
  0x12   :  { %227 = vsyncadd [#allocation5], 4294966912  ;;  %v30_v0 = vld [vmem:[#allocation4 + $0x8] sm:$0xff]  ;;  %v31_v1 = vld [vmem:[#allocation4 + $0x10] sm:$0xff]  ;;  %v231_v7 = vmov 0.0   ;;  %vm232_vm0 = vmmov 0   ;;  %v44_v14 = vstv %s284_s0  ;;  %v50_v19 = vstv %s285_s1 }
  0x13   :  { %v32_v2 = vadd.f32 %v31_v1, %v30_v0  ;;  %v29_v4 = vld [vmem:[#allocation4] sm:$0xff]  ;;  %165 = vmatprep.subr.mxu0 %v231_v7  ;;  %167 = vmatprep.mubr.msk.f32.mxu0 %vm232_vm0, %v231_v7  ;;  %vm121_vm1 = vcmask 64512   ;;  %s233_s0 = smov [#allocation7]   ;;  %vm146_vm2 = vcmask 0  }
  0x14   :  { %v36_v6 = vmul.f32 %v29_v4, %v29_v4  ;;  %s154_s1 = sshll.u32 %s233_s0, 4  ;;  %s155_s1 = int_to_ptr.vmem [resolvable:$true] %s154_s1 }
  0x15   :  { %v33_v3 = vmul.f32 0.5, %v32_v2  ;;  %s204_s27 = scalar_lea.vmem %s155_s1, 16  ;;  %s208_s28 = scalar_lea.vmem %s155_s1, 32 }
  0x16   :  { %p205_p8 = scmp.ne.s32.totalorder %s155_s1, %s204_s27  ;;  %p209_p9 = scmp.lt.s32.totalorder %s155_s1, %s155_s1 }
  0x17   :  { %v39_v5 = vmul.f32 %v33_v3, %v33_v3  ;;  %p210_p10 = scmp.lt.s32.totalorder %s208_s28, %s204_s27 }
  0x19   :  { %40 = vadd.xlane.f32.xlu0 %v39_v5  ;;  %p211_p11 = por %p210_p10, %p209_p9 }
  0x1b   :  { %p212_p12 = pnand %p211_p11, %p205_p8 }
  0x1d   :  { %37 = vadd.xlane.f32.xlu0 %v36_v6 }
  0xa6   :  { %v41_v8 = vpop.xlane.xlu0 %40 }
  0xa7   :  { %v47_v9 = vmax.f32 %v41_v8, 1e-16 }
  0xa9   :  { %174 = vrsqrt.f32 %v47_v9 }
  0xaa   :  { %v38_v10 = vpop.xlane.xlu0 %37 }
  0xab   :  { %v42_v11 = vmax.f32 %v38_v10, 1e-16 }
  0xad   :  { %176 = vrsqrt.f32 %v42_v11 }
  0xb3   :  { %v175_v12 = vpop.eup %174 }
  0xb4   :  { %v49_v13 = vmul.f32 %v175_v12, %v33_v3 }
  0xb6   :  { %166 = vmatpush3.xpose.msra.mxu0 %v49_v13 }
  0xb7   :  { %v177_v15 = vpop.eup %176 }
  0xb8   :  { %v45_v16 = vmul.f32 %v177_v15, %v44_v14 }
  0xba   :  { %v46_v17 = vmul.f32 %v45_v16, %v29_v4 }
  0xbc   :  { %168 = vmatmul.mubr.f32.vlgmr.msra.gmra.mrb[0].mxu0 %v46_v17  ;;  %v134_v18 = vmul.f32 %v49_v13, %v46_v17 }
  0xbe   :  { %135 = vadd.xlane.f32.xlu0 %v134_v18 }
 0x14b   :  { %v136_v31 = vpop.xlane.xlu0 %135 }
 0x14c   :  { %v137_v33 = vadd.f32 %v136_v31, %v50_v19 }
 0x18f   :  { %v117_v20 = vpop.f32.mrb[0].mxu0 }
 0x190   :  { %v118_v21 = vadd.f32 %v117_v20, %v50_v19  ;;  %v169_v22 = vpop.f32.mrb[1].mxu0 }
 0x192   :  { %v122_v23 = vsel %vm121_vm1, %v118_v21, -inf }
 0x193   :  { %123 = vmax.xlane.f32.xlu1 %v122_v23 }
 0x220   :  { %v124_v24 = vpop.xlane.xlu1 %123 }
 0x221   :  { %v125_v25 = vsub.f32 %v118_v21, %v124_v24 }
 0x223   :  { %v126_v26 = vmul.f32 1.442695, %v125_v25 }
 0x225   :  { %178 = vpow2.f32 %v126_v26 }
 0x22f   :  { %v179_v27 = vpop.eup %178 }
 0x230   :  { %v128_v28 = vsel %vm121_vm1, %v179_v27, 0.0 }
 0x231   :  { %129 = vadd.xlane.f32.xlu1 %v128_v28 }
 0x2be   :  { %v130_v29 = vpop.xlane.xlu1 %129 }
 0x2bf   :  { %180 = vlog2.f32 %v130_v29 }
 0x2c9   :  { %v181_v30 = vpop.eup %180 }
 0x2ca   :  { %v132_v32 = vmul.f32 0.6931472, %v181_v30 }
 0x2cc   :  { %v133_v34 = vadd.f32 %v132_v32, %v124_v24 }
 0x2ce   :  { %v138_v35 = vsub.f32 %v133_v34, %v137_v33 }
 0x2d0   :  { %v139_v36 = vrot.slane %v138_v35, 4 }
 0x2d2   :  { %v140_v37 = vadd.f32 %v139_v36, %v138_v35 }
 0x2d4   :  { %v141_v38 = vrot.slane %v140_v37, 2 }
 0x2d6   :  { %v142_v39 = vadd.f32 %v141_v38, %v140_v37 }
 0x2d8   :  { %v143_v40 = vrot.slane %v142_v39, 1 }
 0x2da   :  { %v144_v41 = vadd.f32 %v143_v40, %v142_v39 }
 0x2dc   :  { %v145_v42 = vmul.f32 0.125, %v144_v41 }
 0x2de   :  { %147 = vst.msk [vmem:[#allocation7] sm:$0x1] %vm146_vm2, %v145_v42 }
 0x2df   :  { %215 = shalt.err (!%p212_p12)
}
 0x2e0   :  { %s216_s4 = scalar_lea.hbm %s287_s3, 16 }
 0x2e1   :  { %p217_p13 = scmp.ne.s32.totalorder %s287_s3, %s216_s4  ;;  %p220_p0 = scmp.lt.u32.totalorder %s216_s4, %s287_s3 }
 0x2e3   :  { %p222_p1 = pnand %p220_p0, %p217_p13 }
 0x2e5   :  { %225 = shalt.err (!%p222_p1)
}
 0x2e6   :  { %157 = dma.vmem_to_hbm [thread:$0]  %s155_s1, 16, %s287_s3, [#allocation6]  }
 0x2e7   :  { %228 = dma.done.wait [#allocation6], 16  }
 0x2e8   :  { %229 = vsyncadd [#allocation6], 4294967280 }
 0x2e9   :  { %161 = vsyncpa [#allocation5], 1 }
 0x2ea   :  { %162 = vsyncpa [#allocation6], 1 }

</bundles_post_ra>
